<compile_context>
chip_gen: v6e
topology: v6e:2x2x1
jax: 0.10.0
libtpu: 0.0.40
codegen_flags: <defaults>
</compile_context>

<pallas_src>
import jax
import jax.numpy as jnp
from jax.experimental import pallas as pl
from jax.experimental.pallas import tpu as pltpu

D = 128  # attention_dim (forced to 128 by the GRU(128, 128, 1) in the module)


def attention_kernel(x_ref, h_ref, w_ref, wihT_ref, whhT_ref, bih_ref, bhh_ref, out_ref):
    # x_ref:   (b_blk, T, D)   block of input_padded
    # h_ref:   (b_blk, D)      block of the GRU hidden state
    # w_ref:   (D, D)          Linear weight (no bias)
    # wihT:    (D, 3D)         GRU input weights  (gate order r, z, n), pre-transposed
    # whhT:    (D, 3D)         GRU hidden weights (gate order r, z, n), pre-transposed
    # bih/bhh: (1, 3D)
    # out_ref: (b_blk, 2D)     [gru_out | context]
    x = x_ref[...]
    h = h_ref[...]

    # Folded Linear: v = h @ W, so e = x . v == (x @ W^T) @ h^T.  MXU matmul, negligible.
    v = jnp.dot(h, w_ref[...], preferred_element_type=jnp.float32)   # (b_blk, D)

    # e[b, t] = sum_d x[b,t,d] * v[b,d]
    e = jnp.sum(x * v[:, None, :], axis=-1)                          # (b_blk, T)

    # softmax over the sequence axis (torch dim=1) — exact divide (matches jax.nn.softmax /
    # torch.softmax numerics; the approx reciprocal previously gave ~5e-3 error).
    m = jnp.max(e, axis=-1, keepdims=True)
    p = jnp.exp(e - m)
    a = p / jnp.sum(p, axis=-1, keepdims=True)                       # (b_blk, T)

    # context[b, d] = sum_t x[b,t,d] * a[b,t]
    context = jnp.sum(x * a[:, :, None], axis=1)                     # (b_blk, D)

    # batched single-step GRU (PyTorch gate order: reset, update, new) — MXU matmuls.
    gi = jnp.dot(context, wihT_ref[...], preferred_element_type=jnp.float32) + bih_ref[...]
    gh = jnp.dot(h, whhT_ref[...], preferred_element_type=jnp.float32) + bhh_ref[...]
    r = jax.nn.sigmoid(gi[:, 0 * D:1 * D] + gh[:, 0 * D:1 * D])
    z = jax.nn.sigmoid(gi[:, 1 * D:2 * D] + gh[:, 1 * D:2 * D])
    n = jnp.tanh(gi[:, 2 * D:3 * D] + r * gh[:, 2 * D:3 * D])
    h_new = (1.0 - z) * n + z * h                                    # (b_blk, D)

    # store both halves directly (no concat temporary); lane-dense stores at offsets 0 / 128.
    out_ref[:, :D] = h_new
    out_ref[:, D:] = context


def _round_up8(n):
    return ((n + 7) // 8) * 8


def _choose_b_blk(B, T):
    """Pick a batch block that (a) keeps the streamed x tile a few MiB for DMA amortization,
    (b) divides B whenever possible (no padding copy), and (c) gives >= 2 blocks for large B
    so the parallel grid axis can span both TensorCores on v7x."""
    row_bytes = T * D * 4
    target = max(8, min(2048, (4 << 20) // row_bytes))   # ~4 MiB x tile
    if B <= target:
        if B >= 16 and B % 2 == 0 and (B // 2) % 8 == 0:
            return B // 2                                # two blocks -> both TCs on v7x
        return B                                         # single full-batch block
    # Prefer a divisor of B (no tail padding) that is a multiple of 8 and not too small.
    min_cand = max(128, target // 4)
    for cand in range(target - target % 8, min_cand - 1, -8):
        if B % cand == 0:
            return cand
    # No usable divisor: near-even split; padded tail is then < 8 rows per block.
    n_blocks = pl.cdiv(B, target)
    return _round_up8(pl.cdiv(B, n_blocks))


def attention_forward(input_padded, hidden, w, w_ih, w_hh, b_ih, b_hh, *, b_blk=None):
    """input_padded: (B, T, D) f32; hidden: (1, B, D) f32 (PyTorch GRU hidden layout)."""
    B, T, Dd = input_padded.shape
    assert Dd == D and hidden.shape == (1, B, D)

    h = hidden[0]                                # (B, D)
    wihT = w_ih.T                                # (D, 3D)
    whhT = w_hh.T                                # (D, 3D)
    bih = b_ih.reshape(1, 3 * D)
    bhh = b_hh.reshape(1, 3 * D)

    if b_blk is None:
        b_blk = _choose_b_blk(B, T)
    b_blk = min(b_blk, B)

    x = input_padded
    if B % b_blk != 0:
        # Only the ragged tail is padded (< b_blk rows); zero rows give a uniform softmax
        # over zeros — finite and benign — and are sliced off below.
        Bp = pl.cdiv(B, b_blk) * b_blk
        pad = Bp - B
        x = jnp.pad(x, ((0, pad), (0, 0), (0, 0)))
        h = jnp.pad(h, ((0, pad), (0, 0)))
    else:
        Bp = B
    n_blocks = Bp // b_blk

    # VMEM budget: double-buffered x/h/out tiles + weights, plus the in-kernel
    # elementwise temporaries (x*v, x*a, e/p/a).  Generous 30% headroom.
    x_tile = b_blk * T * D * 4
    h_tile = b_blk * D * 4
    out_tile = b_blk * 2 * D * 4
    weights = (D * D + 2 * D * 3 * D + 2 * 3 * D) * 4
    working = 2 * (x_tile + h_tile + out_tile + weights) + 2 * x_tile + 4 * b_blk * T * 4
    vmem_limit = min(max(int(1.3 * working) + (2 << 20), 32 << 20), 128 << 20)

    out = pl.pallas_call(
        attention_kernel,
        out_shape=jax.ShapeDtypeStruct((Bp, 2 * D), jnp.float32),
        grid=(n_blocks,),
        in_specs=[
            pl.BlockSpec((b_blk, T, D), lambda b: (b, 0, 0)),
            pl.BlockSpec((b_blk, D), lambda b: (b, 0)),
            pl.BlockSpec((D, D), lambda b: (0, 0)),
            pl.BlockSpec((D, 3 * D), lambda b: (0, 0)),
            pl.BlockSpec((D, 3 * D), lambda b: (0, 0)),
            pl.BlockSpec((1, 3 * D), lambda b: (0, 0)),
            pl.BlockSpec((1, 3 * D), lambda b: (0, 0)),
        ],
        out_specs=pl.BlockSpec((b_blk, 2 * D), lambda b: (b, 0)),
        compiler_params=pltpu.CompilerParams(
            dimension_semantics=("parallel",),     # batch blocks are independent
            vmem_limit_bytes=vmem_limit),
    )(x, h, w, wihT, whhT, bih, bhh)
    return out[:B]                                 # (B, 2D), matches torch .squeeze(1)


def attention_reference(input_padded, hidden, w, w_ih, w_hh, b_ih, b_hh):
    """Pure-JAX reference matching the PyTorch forward exactly."""
    xw = jnp.einsum('btd,ed->bte', input_padded, w)                  # Linear, no bias
    hperm = jnp.transpose(hidden, (1, 2, 0))                         # (B, D, 1)
    e = jnp.einsum('bte,bef->btf', xw, hperm)                        # (B, T, 1)
    a = jax.nn.softmax(e, axis=1)
    ctx = jnp.einsum('bdt,btf->bdf', jnp.transpose(input_padded, (0, 2, 1)), a)  # (B, D, 1)
    ctx = jnp.transpose(ctx, (0, 2, 1))                              # (B, 1, D)
    xc = ctx[:, 0, :]
    h = hidden[0]
    gi = xc @ w_ih.T + b_ih
    gh = h @ w_hh.T + b_hh
    r = jax.nn.sigmoid(gi[:, :D] + gh[:, :D])
    z = jax.nn.sigmoid(gi[:, D:2 * D] + gh[:, D:2 * D])
    n = jnp.tanh(gi[:, 2 * D:] + r * gh[:, 2 * D:])
    h_new = (1.0 - z) * n + z * h
    return jnp.concatenate([h_new[:, None, :], ctx], axis=2)[:, 0, :]


if __name__ == "__main__":
    B, T = 2, 8
    key = jax.random.PRNGKey(0)
    ks = jax.random.split(key, 7)
    bound = 1.0 / jnp.sqrt(jnp.float32(D))

    # Deterministic synthetic parameters (shapes from the module's __init__).
    w = jax.random.uniform(ks[0], (D, D), jnp.float32, -bound, bound)           # Linear weight
    w_ih = jax.random.uniform(ks[1], (3 * D, D), jnp.float32, -bound, bound)    # GRU weight_ih_l0
    w_hh = jax.random.uniform(ks[2], (3 * D, D), jnp.float32, -bound, bound)    # GRU weight_hh_l0
    b_ih = jax.random.uniform(ks[3], (3 * D,), jnp.float32, -bound, bound)      # GRU bias_ih_l0
    b_hh = jax.random.uniform(ks[4], (3 * D,), jnp.float32, -bound, bound)      # GRU bias_hh_l0

    input_padded = jax.random.normal(ks[5], (B, T, D), jnp.float32)             # (B, T, 128)
    hidden = jax.random.normal(ks[6], (1, B, D), jnp.float32)                   # (1, B, 128)

    out = attention_forward(input_padded, hidden, w, w_ih, w_hh, b_ih, b_hh)
    out = jax.block_until_ready(out)

    ref = attention_reference(input_padded, hidden, w, w_ih, w_hh, b_ih, b_hh)
    assert out.shape == (B, 2 * D), out.shape
    # Tolerance 5e-4: the folded Linear reorders f32 accumulation vs. the reference; the
    # softmax now uses an exact divide so no approximation error remains.
    assert jnp.allclose(out, ref, atol=5e-4, rtol=5e-4), float(jnp.max(jnp.abs(out - ref)))

    print("KERNEL_OK")
</pallas_src>

<mosaic_0001>
module attributes {stable_mosaic.version = 11 : i64} {
  func.func @attention_kernel(%arg0: i32, %arg1: memref<2x8x128xf32, #tpu.memory_space<vmem>>, %arg2: memref<2x128xf32, #tpu.memory_space<vmem>>, %arg3: memref<128x128xf32, #tpu.memory_space<vmem>>, %arg4: memref<128x384xf32, #tpu.memory_space<vmem>>, %arg5: memref<128x384xf32, #tpu.memory_space<vmem>>, %arg6: memref<1x384xf32, #tpu.memory_space<vmem>>, %arg7: memref<1x384xf32, #tpu.memory_space<vmem>>, %arg8: memref<2x256xf32, #tpu.memory_space<vmem>>) attributes {dimension_semantics = [#tpu.dimension_semantics<parallel>], iteration_bounds = array<i64: 1>, scalar_prefetch = 0 : i64, scratch_operands = 0 : i64, tpu.core_type = #tpu.core_type<tc>, window_params = [{transform_indices = @transform_0, window_bounds = array<i64: 2, 8, 128>}, {transform_indices = @transform_1, window_bounds = array<i64: 2, 128>}, {pipeline_mode = #tpu.pipeline_mode<synchronous>, transform_indices = @transform_2, window_bounds = array<i64: 128, 128>}, {pipeline_mode = #tpu.pipeline_mode<synchronous>, transform_indices = @transform_3, window_bounds = array<i64: 128, 384>}, {pipeline_mode = #tpu.pipeline_mode<synchronous>, transform_indices = @transform_4, window_bounds = array<i64: 128, 384>}, {pipeline_mode = #tpu.pipeline_mode<synchronous>, transform_indices = @transform_5, window_bounds = array<i64: 1, 384>}, {pipeline_mode = #tpu.pipeline_mode<synchronous>, transform_indices = @transform_6, window_bounds = array<i64: 1, 384>}, {transform_indices = @transform_7, window_bounds = array<i64: 2, 256>}]} {
    %c0 = arith.constant 0 : index
    %c0_0 = arith.constant 0 : index
    %c0_1 = arith.constant 0 : index
    %0 = vector.load %arg1[%c0, %c0_0, %c0_1] : memref<2x8x128xf32, #tpu.memory_space<vmem>>, vector<2x8x128xf32>
    %c0_2 = arith.constant 0 : index
    %c0_3 = arith.constant 0 : index
    %1 = vector.load %arg2[%c0_2, %c0_3] : memref<2x128xf32, #tpu.memory_space<vmem>>, vector<2x128xf32>
    %c0_4 = arith.constant 0 : index
    %c0_5 = arith.constant 0 : index
    %2 = vector.load %arg3[%c0_4, %c0_5] : memref<128x128xf32, #tpu.memory_space<vmem>>, vector<128x128xf32>
    %cst = arith.constant dense<0.000000e+00> : vector<2x128xf32>
    %3 = tpu.matmul %1, %2, %cst {dimension_numbers = #tpu.dot_dimension_numbers<[1], [0], [0], [1], [0, 0, 1, 1], [], []>} : vector<2x128xf32>, vector<128x128xf32>, vector<2x128xf32> -> vector<2x128xf32>
    %4 = vector.shape_cast %3 : vector<2x128xf32> to vector<2x1x128xf32>
    %5 = vector.broadcast %4 : vector<2x1x128xf32> to vector<2x8x128xf32>
    %6 = arith.mulf %0, %5 : vector<2x8x128xf32>
    %cst_6 = arith.constant dense<0.000000e+00> : vector<2x8xf32>
    %7 = vector.multi_reduction <add>, %6, %cst_6 [2] : vector<2x8x128xf32> to vector<2x8xf32>
    %cst_7 = arith.constant dense<0xFF800000> : vector<2xf32>
    %8 = vector.multi_reduction <maximumf>, %7, %cst_7 [1] : vector<2x8xf32> to vector<2xf32>
    %9 = vector.shape_cast %8 : vector<2xf32> to vector<2x1xf32>
    %10 = vector.broadcast %9 : vector<2x1xf32> to vector<2x8xf32>
    %11 = arith.subf %7, %10 : vector<2x8xf32>
    %12 = math.exp %11 : vector<2x8xf32>
    %cst_8 = arith.constant dense<0.000000e+00> : vector<2xf32>
    %13 = vector.multi_reduction <add>, %12, %cst_8 [1] : vector<2x8xf32> to vector<2xf32>
    %14 = vector.shape_cast %13 : vector<2xf32> to vector<2x1xf32>
    %15 = vector.broadcast %14 : vector<2x1xf32> to vector<2x8xf32>
    %16 = arith.divf %12, %15 : vector<2x8xf32>
    %17 = vector.shape_cast %16 : vector<2x8xf32> to vector<2x8x1xf32>
    %18 = vector.broadcast %17 : vector<2x8x1xf32> to vector<2x8x128xf32>
    %19 = arith.mulf %0, %18 : vector<2x8x128xf32>
    %cst_9 = arith.constant dense<0.000000e+00> : vector<2x128xf32>
    %20 = vector.multi_reduction <add>, %19, %cst_9 [1] : vector<2x8x128xf32> to vector<2x128xf32>
    %c0_10 = arith.constant 0 : index
    %c0_11 = arith.constant 0 : index
    %21 = vector.load %arg4[%c0_10, %c0_11] : memref<128x384xf32, #tpu.memory_space<vmem>>, vector<128x384xf32>
    %cst_12 = arith.constant dense<0.000000e+00> : vector<2x384xf32>
    %22 = tpu.matmul %20, %21, %cst_12 {dimension_numbers = #tpu.dot_dimension_numbers<[1], [0], [0], [1], [0, 0, 1, 1], [], []>} : vector<2x128xf32>, vector<128x384xf32>, vector<2x384xf32> -> vector<2x384xf32>
    %c0_13 = arith.constant 0 : index
    %c0_14 = arith.constant 0 : index
    %23 = vector.load %arg6[%c0_13, %c0_14] : memref<1x384xf32, #tpu.memory_space<vmem>>, vector<1x384xf32>
    %24 = vector.broadcast %23 : vector<1x384xf32> to vector<2x384xf32>
    %25 = arith.addf %22, %24 : vector<2x384xf32>
    %c0_15 = arith.constant 0 : index
    %c0_16 = arith.constant 0 : index
    %26 = vector.load %arg5[%c0_15, %c0_16] : memref<128x384xf32, #tpu.memory_space<vmem>>, vector<128x384xf32>
    %cst_17 = arith.constant dense<0.000000e+00> : vector<2x384xf32>
    %27 = tpu.matmul %1, %26, %cst_17 {dimension_numbers = #tpu.dot_dimension_numbers<[1], [0], [0], [1], [0, 0, 1, 1], [], []>} : vector<2x128xf32>, vector<128x384xf32>, vector<2x384xf32> -> vector<2x384xf32>
    %c0_18 = arith.constant 0 : index
    %c0_19 = arith.constant 0 : index
    %28 = vector.load %arg7[%c0_18, %c0_19] : memref<1x384xf32, #tpu.memory_space<vmem>>, vector<1x384xf32>
    %29 = vector.broadcast %28 : vector<1x384xf32> to vector<2x384xf32>
    %30 = arith.addf %27, %29 : vector<2x384xf32>
    %31 = vector.extract_strided_slice %25 {offsets = [0, 0], sizes = [2, 128], strides = [1, 1]} : vector<2x384xf32> to vector<2x128xf32>
    %32 = vector.extract_strided_slice %30 {offsets = [0, 0], sizes = [2, 128], strides = [1, 1]} : vector<2x384xf32> to vector<2x128xf32>
    %33 = arith.addf %31, %32 : vector<2x128xf32>
    %34 = arith.negf %33 : vector<2x128xf32>
    %35 = math.exp %34 : vector<2x128xf32>
    %cst_20 = arith.constant 1.000000e+00 : f32
    %36 = vector.broadcast %cst_20 : f32 to vector<2x128xf32>
    %37 = arith.addf %36, %35 : vector<2x128xf32>
    %38 = arith.divf %36, %37 : vector<2x128xf32>
    %39 = vector.extract_strided_slice %25 {offsets = [0, 128], sizes = [2, 128], strides = [1, 1]} : vector<2x384xf32> to vector<2x128xf32>
    %40 = vector.extract_strided_slice %30 {offsets = [0, 128], sizes = [2, 128], strides = [1, 1]} : vector<2x384xf32> to vector<2x128xf32>
    %41 = arith.addf %39, %40 : vector<2x128xf32>
    %42 = arith.negf %41 : vector<2x128xf32>
    %43 = math.exp %42 : vector<2x128xf32>
    %cst_21 = arith.constant 1.000000e+00 : f32
    %44 = vector.broadcast %cst_21 : f32 to vector<2x128xf32>
    %45 = arith.addf %44, %43 : vector<2x128xf32>
    %46 = arith.divf %44, %45 : vector<2x128xf32>
    %47 = vector.extract_strided_slice %25 {offsets = [0, 256], sizes = [2, 128], strides = [1, 1]} : vector<2x384xf32> to vector<2x128xf32>
    %48 = vector.extract_strided_slice %30 {offsets = [0, 256], sizes = [2, 128], strides = [1, 1]} : vector<2x384xf32> to vector<2x128xf32>
    %49 = arith.mulf %38, %48 : vector<2x128xf32>
    %50 = arith.addf %47, %49 : vector<2x128xf32>
    %51 = math.tanh %50 : vector<2x128xf32>
    %cst_22 = arith.constant 1.000000e+00 : f32
    %52 = vector.broadcast %cst_22 : f32 to vector<2x128xf32>
    %53 = arith.subf %52, %46 : vector<2x128xf32>
    %54 = arith.mulf %53, %51 : vector<2x128xf32>
    %55 = arith.mulf %46, %1 : vector<2x128xf32>
    %56 = arith.addf %54, %55 : vector<2x128xf32>
    %c0_23 = arith.constant 0 : index
    %c0_24 = arith.constant 0 : index
    %57 = vector.load %arg8[%c0_23, %c0_24] : memref<2x256xf32, #tpu.memory_space<vmem>>, vector<2x128xf32>
    tpu.vector_store %arg8[%c0_23, %c0_24], %56 {strides = array<i32>} : memref<2x256xf32, #tpu.memory_space<vmem>>, vector<2x128xf32>,
    %c0_25 = arith.constant 0 : index
    %c128 = arith.constant 128 : index
    %58 = vector.load %arg8[%c0_25, %c128] : memref<2x256xf32, #tpu.memory_space<vmem>>, vector<2x128xf32>
    tpu.vector_store %arg8[%c0_25, %c128], %20 {strides = array<i32>} : memref<2x256xf32, #tpu.memory_space<vmem>>, vector<2x128xf32>,
    return
  }
  func.func @transform_0(%arg0: i32) -> (i32, i32, i32) {
    %c0_i32 = arith.constant 0 : i32
    %c0_i32_0 = arith.constant 0 : i32
    %c0_i32_1 = arith.constant 0 : i32
    return %arg0, %c0_i32, %c0_i32_0 : i32, i32, i32
  }
  func.func @transform_1(%arg0: i32) -> (i32, i32) {
    %c0_i32 = arith.constant 0 : i32
    %c0_i32_0 = arith.constant 0 : i32
    return %arg0, %c0_i32 : i32, i32
  }
  func.func @transform_2(%arg0: i32) -> (i32, i32) {
    %c0_i32 = arith.constant 0 : i32
    %c0_i32_0 = arith.constant 0 : i32
    %c0_i32_1 = arith.constant 0 : i32
    return %c0_i32, %c0_i32_0 : i32, i32
  }
  func.func @transform_3(%arg0: i32) -> (i32, i32) {
    %c0_i32 = arith.constant 0 : i32
    %c0_i32_0 = arith.constant 0 : i32
    %c0_i32_1 = arith.constant 0 : i32
    return %c0_i32, %c0_i32_0 : i32, i32
  }
  func.func @transform_4(%arg0: i32) -> (i32, i32) {
    %c0_i32 = arith.constant 0 : i32
    %c0_i32_0 = arith.constant 0 : i32
    %c0_i32_1 = arith.constant 0 : i32
    return %c0_i32, %c0_i32_0 : i32, i32
  }
  func.func @transform_5(%arg0: i32) -> (i32, i32) {
    %c0_i32 = arith.constant 0 : i32
    %c0_i32_0 = arith.constant 0 : i32
    %c0_i32_1 = arith.constant 0 : i32
    return %c0_i32, %c0_i32_0 : i32, i32
  }
  func.func @transform_6(%arg0: i32) -> (i32, i32) {
    %c0_i32 = arith.constant 0 : i32
    %c0_i32_0 = arith.constant 0 : i32
    %c0_i32_1 = arith.constant 0 : i32
    return %c0_i32, %c0_i32_0 : i32, i32
  }
  func.func @transform_7(%arg0: i32) -> (i32, i32) {
    %c0_i32 = arith.constant 0 : i32
    %c0_i32_0 = arith.constant 0 : i32
    return %arg0, %c0_i32 : i32, i32
  }
}

</mosaic_0001>

<bundles_post_ra>
// kernel: tpu_custom_call.1
= control target key start
LH: loop header
LB: loop body
LE: loop exit
PB: predicated region body
PF: predicated region fallthrough
CT: control target
= control target key end

     0   :  { %12 = vsyncpa [#allocation3], 0  ;;  %s1312_s0 = inlined_call_operand.hbm [shape: f32[2,8,128], index: 0, kind: input, shape index: {}]   ;;  %s1313_s1 = inlined_call_operand.hbm [shape: f32[2,128], index: 1, kind: input, shape index: {}]   ;;  %s1314_s2 = inlined_call_operand.hbm [shape: f32[128,128], index: 2, kind: input, shape index: {}]   ;;  %s1315_s3 = inlined_call_operand.hbm [shape: f32[128,384], index: 3, kind: input, shape index: {}]   ;;  %s1316_s4 = inlined_call_operand.hbm [shape: f32[128,384], index: 4, kind: input, shape index: {}]   ;;  %s1317_s5 = inlined_call_operand.vmem [shape: f32[1,384], index: 5, kind: input, shape index: {}]   ;;  %s1318_s6 = inlined_call_operand.vmem [shape: f32[1,384], index: 6, kind: input, shape index: {}]   ;;  %s1319_s7 = inlined_call_operand.hbm [shape: f32[2,256], index: 7, kind: output, shape index: {}]  }
   0x1   :  { %13 = vsyncpa [#allocation6], 0 }
   0x2   :  { %14 = vsyncpa [#allocation9], 0 }
   0x3   :  { %15 = vsyncpa [#allocation4], 0  ;;  %s1121_s24 = smov [#allocation5]   ;;  %s1122_s26 = smov [#allocation8]  }
   0x4   :  { %s34_s25 = sshll.u32 %s1121_s24, 4  ;;  %s55_s27 = sshll.u32 %s1122_s26, 4  ;;  %s35_s25 = int_to_ptr.vmem [resolvable:$true] %s34_s25  ;;  %s56_s27 = int_to_ptr.vmem [resolvable:$true] %s55_s27 }
   0x5   :  { %s1001_s28 = scalar_lea.vmem %s35_s25, 32  ;;  %p1006_p1 = scmp.lt.s32.totalorder %s35_s25, %s35_s25 }
   0x6   :  { %p1002_p0 = scmp.ne.s32.totalorder %s35_s25, %s1001_s28  ;;  %p1007_p2 = scmp.lt.s32.totalorder %s1001_s28, %s1001_s28 }
   0x8   :  { %p1008_p3 = por %p1007_p2, %p1006_p1 }
   0xa   :  { %p1009_p4 = pnand %p1008_p3, %p1002_p0 }
   0xc   :  { %1012 = shalt.err (!%p1009_p4)
}
   0xd   :  { %37 = dma.hbm_to_vmem [thread:$0]  %s1313_s1, 32, %s35_s25, [#allocation6]  }
   0xe   :  { %s1021_s8 = scalar_lea.vmem %s56_s27, 6144  ;;  %p1026_p6 = scmp.lt.s32.totalorder %s56_s27, %s56_s27 }
   0xf   :  { %p1022_p5 = scmp.ne.s32.totalorder %s56_s27, %s1021_s8  ;;  %p1027_p7 = scmp.lt.s32.totalorder %s1021_s8, %s1021_s8 }
  0x11   :  { %p1028_p8 = por %p1027_p7, %p1026_p6 }
  0x13   :  { %p1029_p9 = pnand %p1028_p8, %p1022_p5 }
  0x15   :  { %1032 = shalt.err (!%p1029_p9)
}
  0x16   :  { %s1123_s9 = smov 384   ;;  %s1124_s10 = smov 24  }
  0x17   :  { %61 = dma.hbm_to_vmem [thread:$0]  %s1315_s3, 6144, %s56_s27, [#allocation9], %s1123_s9, %s1123_s9, %s1124_s10  }
  0x18   :  { %s1125_s13 = smov [#allocation2]  }
  0x19   :  { %s21_s14 = sshll.u32 %s1125_s13, 4  ;;  %s22_s14 = int_to_ptr.vmem [resolvable:$true] %s21_s14 }
  0x1a   :  { %s1041_s1 = scalar_lea.vmem %s22_s14, 256  ;;  %p1046_p11 = scmp.lt.s32.totalorder %s22_s14, %s22_s14 }
  0x1b   :  { %p1042_p10 = scmp.ne.s32.totalorder %s22_s14, %s1041_s1  ;;  %p1047_p12 = scmp.lt.s32.totalorder %s1041_s1, %s1041_s1 }
  0x1d   :  { %p1048_p13 = por %p1047_p12, %p1046_p11 }
  0x1f   :  { %p1049_p0 = pnand %p1048_p13, %p1042_p10 }
  0x21   :  { %1052 = shalt.err (!%p1049_p0)
}
  0x22   :  { %s1126_s15 = smov 128   ;;  %s1127_s16 = smov 8  }
  0x23   :  { %27 = dma.hbm_to_vmem [thread:$0]  %s1312_s0, 256, %s22_s14, [#allocation3], %s1126_s15, %s1126_s15, %s1127_s16  }
  0x24   :  { %s1128_s19 = smov [#allocation7]   ;;  %s1129_s3 = smov [#allocation10]  }
  0x25   :  { %s43_s20 = sshll.u32 %s1128_s19, 4  ;;  %s67_s21 = sshll.u32 %s1129_s3, 4  ;;  %s44_s20 = int_to_ptr.vmem [resolvable:$true] %s43_s20  ;;  %s68_s21 = int_to_ptr.vmem [resolvable:$true] %s67_s21 }
  0x26   :  { %s1061_s22 = scalar_lea.vmem %s44_s20, 2048  ;;  %p1066_p2 = scmp.lt.s32.totalorder %s44_s20, %s44_s20 }
  0x27   :  { %p1062_p1 = scmp.ne.s32.totalorder %s44_s20, %s1061_s22  ;;  %p1067_p3 = scmp.lt.s32.totalorder %s1061_s22, %s1061_s22 }
  0x29   :  { %p1068_p4 = por %p1067_p3, %p1066_p2 }
  0x2b   :  { %p1069_p5 = pnand %p1068_p4, %p1062_p1 }
  0x2d   :  { %1072 = shalt.err (!%p1069_p5)
}
  0x2e   :  { %49 = dma.hbm_to_vmem [thread:$0]  %s1314_s2, 2048, %s44_s20, [#allocation6], %s1126_s15, %s1126_s15, %s1127_s16  }
  0x2f   :  { %s1081_s25 = scalar_lea.vmem %s68_s21, 6144  ;;  %p1086_p7 = scmp.lt.s32.totalorder %s68_s21, %s68_s21 }
  0x30   :  { %p1082_p6 = scmp.ne.s32.totalorder %s68_s21, %s1081_s25  ;;  %p1087_p8 = scmp.lt.s32.totalorder %s1081_s25, %s1081_s25 }
  0x32   :  { %p1088_p9 = por %p1087_p8, %p1086_p7 }
  0x34   :  { %p1089_p10 = pnand %p1088_p9, %p1082_p6 }
  0x36   :  { %1092 = shalt.err (!%p1089_p10)
}
  0x37   :  { %73 = dma.hbm_to_vmem [thread:$0]  %s1316_s4, 6144, %s68_s21, [#allocation9], %s1123_s9, %s1123_s9, %s1124_s10  }
  0x38   :  { %1113 = dma.done.wait [#allocation3], 256  }
  0x39   :  { %1114 = vsyncadd [#allocation3], 4294967040 }
  0x3a   :  { %1115 = dma.done.wait [#allocation6], 2080  }
  0x3b   :  { %1116 = vsyncadd [#allocation6], 4294965216 }
  0x3c   :  { %1117 = dma.done.wait [#allocation9], 12288  }
  0x3d   :  { %1118 = vsyncadd [#allocation9], 4294955008  ;;  %v1130_v0 = vmov 0.0   ;;  %vm1131_vm0 = vmmov 0   ;;  %v111_v1 = vld [vmem:[#allocation7 + $0x78] sm:$0xff]  ;;  %v110_v2 = vld [vmem:[#allocation7 + $0x70] sm:$0xff]  ;;  %v186_v20 = vlaneseq }
  0x3e   :  { %853 = vmatprep.subr.mxu0 %v1130_v0  ;;  %885 = vmatprep.mubr.msk.f32.mxu0 %vm1131_vm0, %v1130_v0  ;;  %v109_v3 = vld [vmem:[#allocation7 + $0x68] sm:$0xff]  ;;  %v108_v4 = vld [vmem:[#allocation7 + $0x60] sm:$0xff]  ;;  %v107_v5 = vld [vmem:[#allocation7 + $0x58] sm:$0xff]  ;;  %v1132_v18 = vmov 1966171168   ;;  %vm233_vm1 = vcmask 1041409  }
  0x3f   :  { %450 = vmatprep.mubr.f32.mxu1 %v1130_v0  ;;  %854 = vmatpush3.msra.mxu0 %v111_v1  ;;  %v106_v6 = vld [vmem:[#allocation7 + $0x50] sm:$0xff]  ;;  %v105_v7 = vld [vmem:[#allocation7 + $0x48] sm:$0xff]  ;;  %v104_v8 = vld [vmem:[#allocation7 + $0x40] sm:$0xff]  ;;  %v184_v19 = vunpack.c.l.s4 %v1132_v18  ;;  %v1222_v22 = vshrl.u32 %v186_v20, 7  ;;  %v224_v37 = vand.u32 127, %v186_v20  ;;  %vm236_vm2 = vcmask 58368  }
  0x40   :  { %855 = vmatprep.subr.mxu0 %v1130_v0  ;;  %v103_v9 = vld [vmem:[#allocation7 + $0x38] sm:$0xff]  ;;  %v102_v10 = vld [vmem:[#allocation7 + $0x30] sm:$0xff]  ;;  %v101_v11 = vld [vmem:[#allocation7 + $0x28] sm:$0xff]  ;;  %v1133_v45 = vmov 0   ;;  %vm775_vm3 = vcmask 1043459   ;;  %vm777_vm4 = vcmask 1045509  }
  0x41   :  { %856 = vmatpush3.msra.mxu0 %v110_v2  ;;  %v100_v12 = vld [vmem:[#allocation7 + $0x20] sm:$0xff]  ;;  %v99_v13 = vld [vmem:[#allocation7 + $0x18] sm:$0xff]  ;;  %v98_v14 = vld [vmem:[#allocation7 + $0x10] sm:$0xff]  ;;  %v185_v21 = vunpack.c.0.s8 %v184_v19  ;;  %v1226_v26 = vsub.s32 0, %v1222_v22  ;;  %v227_v39 = vsub.s32 %v224_v37, %v1222_v22  ;;  %974 = vset.pattern.permute.xlu0 %v1133_v45  ;;  %v1240_v46 = vsub.s32 1, %v1222_v22 }
  0x42   :  { %857 = vmatprep.subr.mxu0 %v1130_v0  ;;  %v97_v15 = vld [vmem:[#allocation7 + $0x8] sm:$0xff]  ;;  %v96_v16 = vld [vmem:[#allocation7] sm:$0xff]  ;;  %v1215_v17 = vld [vmem:[#allocation5] sm:$0x3]  ;;  %973 = vset.pattern.permute.xlu1 %v1133_v45  ;;  %vm779_vm5 = vcmask 1047559  }
  0x43   :  { %858 = vmatpush3.msra.mxu0 %v109_v3  ;;  %v188_v23 = vsub.s32 %v185_v21, %v1222_v22  ;;  %v1228_v30 = vld [vmem:[#allocation2] sm:$0xff]  ;;  %v1233_v35 = vld [vmem:[#allocation2 + $0x8] sm:$0xff]  ;;  %v345_v18 = vld [vmem:[#allocation8 + $0xe0] sm:$0xff] }
  0x44   :  { %859 = vmatprep.subr.mxu0 %v1130_v0  ;;  %v363_v62 = vld [vmem:[#allocation8 + $0x170] sm:$0xff]  ;;  %v362_v63 = vld [vmem:[#allocation8 + $0x168] sm:$0xff]  ;;  %v360_v1 = vld [vmem:[#allocation8 + $0x158] sm:$0xff] }
  0x45   :  { %860 = vmatpush3.msra.mxu0 %v108_v4  ;;  %386 = vmatprep.subr.mxu1 %v363_v62  ;;  %v364_v2 = vld [vmem:[#allocation8 + $0x178] sm:$0xff]  ;;  %v359_v3 = vld [vmem:[#allocation8 + $0x150] sm:$0xff]  ;;  %v357_v4 = vld [vmem:[#allocation8 + $0x140] sm:$0xff] }
  0x46   :  { %861 = vmatprep.subr.mxu0 %v1130_v0  ;;  %387 = vmatpush1.msra.mxu1 %v362_v63  ;;  %v344_v19 = vld [vmem:[#allocation8 + $0xd8] sm:$0xff]  ;;  %v329_v45 = vld [vmem:[#allocation8 + $0x60] sm:$0xff] }
  0x47   :  { %862 = vmatpush3.msra.mxu0 %v107_v5  ;;  %v361_v5 = vld [vmem:[#allocation8 + $0x160] sm:$0xff]  ;;  %388 = vmatprep.subr.mxu1 %v360_v1  ;;  %v340_v37 = vld [vmem:[#allocation8 + $0xb8] sm:$0xff] }
  0x48   :  { %863 = vmatprep.subr.mxu0 %v1130_v0  ;;  %389 = vmatpush1.msra.mxu1 %v359_v3 }
  0x49   :  { %864 = vmatpush3.msra.mxu0 %v106_v6  ;;  %v356_v6 = vld [vmem:[#allocation8 + $0x138] sm:$0xff]  ;;  %390 = vmatprep.subr.mxu1 %v357_v4 }
  0x4a   :  { %865 = vmatprep.subr.mxu0 %v1130_v0  ;;  %391 = vmatpush1.msra.mxu1 %v356_v6 }
  0x4b   :  { %866 = vmatpush3.msra.mxu0 %v105_v7  ;;  %v358_v7 = vld [vmem:[#allocation8 + $0x148] sm:$0xff] }
  0x4c   :  { %867 = vmatprep.subr.mxu0 %v1130_v0 }
  0x4d   :  { %868 = vmatpush3.msra.mxu0 %v104_v8  ;;  %v354_v8 = vld [vmem:[#allocation8 + $0x128] sm:$0xff] }
  0x4e   :  { %869 = vmatprep.subr.mxu0 %v1130_v0  ;;  %392 = vmatprep.subr.mxu1 %v354_v8  ;;  %v1134_v8 = vmov 1983009808  }
  0x4f   :  { %870 = vmatpush3.msra.mxu0 %v103_v9  ;;  %v353_v9 = vld [vmem:[#allocation8 + $0x120] sm:$0xff] }
  0x50   :  { %871 = vmatprep.subr.mxu0 %v1130_v0  ;;  %393 = vmatpush1.msra.mxu1 %v353_v9  ;;  %v756_v9 = vunpack.c.l.s4 %v1134_v8  ;;  %v535_v8 = vld [vmem:[#allocation10 + $0x40] sm:$0xff] }
  0x51   :  { %872 = vmatpush3.msra.mxu0 %v102_v10  ;;  %v355_v10 = vld [vmem:[#allocation8 + $0x130] sm:$0xff] }
  0x52   :  { %873 = vmatprep.subr.mxu0 %v1130_v0 }
  0x53   :  { %874 = vmatpush3.msra.mxu0 %v101_v11  ;;  %v351_v11 = vld [vmem:[#allocation8 + $0x110] sm:$0xff] }
  0x54   :  { %875 = vmatprep.subr.mxu0 %v1130_v0  ;;  %394 = vmatprep.subr.mxu1 %v351_v11 }
  0x55   :  { %876 = vmatpush3.msra.mxu0 %v100_v12  ;;  %v350_v12 = vld [vmem:[#allocation8 + $0x108] sm:$0xff] }
  0x56   :  { %877 = vmatprep.subr.mxu0 %v1130_v0  ;;  %395 = vmatpush1.msra.mxu1 %v350_v12 }
  0x57   :  { %878 = vmatpush3.msra.mxu0 %v99_v13  ;;  %v352_v13 = vld [vmem:[#allocation8 + $0x118] sm:$0xff] }
  0x58   :  { %879 = vmatprep.subr.mxu0 %v1130_v0 }
  0x59   :  { %880 = vmatpush3.msra.mxu0 %v98_v14  ;;  %v348_v14 = vld [vmem:[#allocation8 + $0xf8] sm:$0xff] }
  0x5a   :  { %881 = vmatprep.subr.mxu0 %v1130_v0  ;;  %396 = vmatprep.subr.mxu1 %v348_v14 }
  0x5b   :  { %882 = vmatpush3.msra.mxu0 %v97_v15  ;;  %v347_v15 = vld [vmem:[#allocation8 + $0xf0] sm:$0xff] }
  0x5c   :  { %883 = vmatprep.subr.mxu0 %v1130_v0  ;;  %397 = vmatpush1.msra.mxu1 %v347_v15 }
  0x5d   :  { %884 = vmatpush3.msra.mxu0 %v96_v16  ;;  %v349_v16 = vld [vmem:[#allocation8 + $0x100] sm:$0xff]  ;;  %398 = vmatprep.subr.mxu1 %v345_v18  ;;  %v572_v18 = vld [vmem:[#allocation10 + $0x168] sm:$0xff] }
  0x5e   :  { %886 = vmatmul.mubr.f32.vlgmr.msra.gmra.mxu0 %v1215_v17  ;;  %888 = vmatprep.subr.mxu0 %v1130_v0 }
  0x5f   :  { %920 = vmatprep.mubr.msk.f32.mxu0 %vm1131_vm0, %v1130_v0  ;;  %889 = vmatpush3.msra.mxu0 %v364_v2 }
  0x60   :  { %890 = vmatprep.subr.mxu0 %v1130_v0  ;;  %399 = vmatpush1.msra.mxu1 %v344_v19 }
  0x61   :  { %891 = vmatpush3.msra.mxu0 %v361_v5 }
  0x62   :  { %892 = vmatprep.subr.mxu0 %v1130_v0 }
  0x63   :  { %893 = vmatpush3.msra.mxu0 %v358_v7 }
  0x64   :  { %894 = vmatprep.subr.mxu0 %v1130_v0 }
  0x65   :  { %895 = vmatpush3.msra.mxu0 %v355_v10 }
  0x66   :  { %896 = vmatprep.subr.mxu0 %v1130_v0 }
  0x67   :  { %897 = vmatpush3.msra.mxu0 %v352_v13  ;;  %v757_v13 = vunpack.c.0.s8 %v756_v9  ;;  %v530_v9 = vld [vmem:[#allocation10 + $0x18] sm:$0xff] }
  0x68   :  { %898 = vmatprep.subr.mxu0 %v1130_v0 }
  0x69   :  { %899 = vmatpush3.msra.mxu0 %v349_v16 }
  0x6a   :  { %900 = vmatprep.subr.mxu0 %v1130_v0 }
 0x11e   :  { %v178_v24 = vpop.f32.mrf.mxu0 }
 0x11f   :  { %v189_v25 = vrot.slane %v178_v24, %v188_v23  ;;  %v342_v24 = vld [vmem:[#allocation8 + $0xc8] sm:$0xff] }
 0x120   :  { %v887_v27 = vpop.f32.mrf.mxu0  ;;  %400 = vmatprep.subr.mxu1 %v342_v24 }
 0x121   :  { %v190_v28 = vcombine.high %v189_v25, %v189_v25  ;;  %v197_v29 = vrot.slane %v189_v25, %v188_v23  ;;  %v346_v25 = vld [vmem:[#allocation8 + $0xe8] sm:$0xff] }
 0x122   :  { %901 = vmatpush3.msra.mxu0 %v346_v25 }
 0x123   :  { %v204_v31 = vrot.slane %v190_v28, %v188_v23  ;;  %v208_v32 = vrot.slane %v197_v29, %v1226_v26  ;;  %v341_v28 = vld [vmem:[#allocation8 + $0xc0] sm:$0xff]  ;;  %902 = vmatprep.subr.mxu0 %v1130_v0 }
 0x124   :  { %401 = vmatpush1.msra.mxu1 %v341_v28  ;;  %v571_v28 = vld [vmem:[#allocation10 + $0x160] sm:$0xff] }
 0x125   :  { %v215_v33 = vmul.f32 %v208_v32, %v1228_v30  ;;  %v212_v34 = vrot.slane %v204_v31, %v1226_v26  ;;  %v339_v31 = vld [vmem:[#allocation8 + $0xb0] sm:$0xff] }
 0x126   :  { %v343_v32 = vld [vmem:[#allocation8 + $0xd0] sm:$0xff]  ;;  %402 = vmatprep.subr.mxu1 %v339_v31  ;;  %v564_v31 = vld [vmem:[#allocation10 + $0x128] sm:$0xff] }
 0x127   :  { %217 = vadd.xlane.f32.xlu0 %v215_v33  ;;  %v216_v36 = vmul.f32 %v212_v34, %v1233_v35  ;;  %903 = vmatpush3.msra.mxu0 %v343_v32  ;;  %v338_v34 = vld [vmem:[#allocation8 + $0xa8] sm:$0xff] }
 0x128   :  { %403 = vmatpush1.msra.mxu1 %v338_v34  ;;  %904 = vmatprep.subr.mxu0 %v1130_v0  ;;  %v568_v32 = vld [vmem:[#allocation10 + $0x148] sm:$0xff]  ;;  %v563_v34 = vld [vmem:[#allocation10 + $0x120] sm:$0xff] }
 0x129   :  { %905 = vmatpush3.msra.mxu0 %v340_v37  ;;  %v561_v37 = vld [vmem:[#allocation10 + $0x110] sm:$0xff] }
 0x12a   :  { %906 = vmatprep.subr.mxu0 %v1130_v0 }
 0x12b   :  { %219 = vadd.xlane.f32.xlu0 %v216_v36  ;;  %v336_v36 = vld [vmem:[#allocation8 + $0x98] sm:$0xff] }
 0x12c   :  { %404 = vmatprep.subr.mxu1 %v336_v36 }
 0x1b0   :  { %v218_v38 = vpop.xlane.xlu0 %217 }
 0x1b1   :  { %v228_v41 = vrot.slane %v218_v38, %v227_v39 }
 0x1b4   :  { %v220_v40 = vpop.xlane.xlu0 %219 }
 0x1b5   :  { %v232_v42 = vrot.slane %v220_v40, %v227_v39 }
 0x1b7   :  { %v234_v43 = vsel %vm233_vm1, %v232_v42, %v228_v41  ;;  %v337_v41 = vld [vmem:[#allocation8 + $0xa0] sm:$0xff]  ;;  %v332_v42 = vld [vmem:[#allocation8 + $0x78] sm:$0xff] }
 0x1b8   :  { %v237_v44 = vsel %vm236_vm2, %v234_v43, -inf  ;;  %907 = vmatpush3.msra.mxu0 %v337_v41  ;;  %v330_v43 = vld [vmem:[#allocation8 + $0x68] sm:$0xff] }
 0x1b9   :  { %238 = vmax.xlane.f32.xlu1 %v237_v44  ;;  %v334_v44 = vld [vmem:[#allocation8 + $0x88] sm:$0xff]  ;;  %908 = vmatprep.subr.mxu0 %v1130_v0 }
 0x1ba   :  { %909 = vmatpush3.msra.mxu0 %v334_v44  ;;  %v557_v44 = vld [vmem:[#allocation10 + $0xf0] sm:$0xff] }
 0x1bb   :  { %910 = vmatprep.subr.mxu0 %v1130_v0 }
 0x242   :  { %v239_v47 = vpop.xlane.xlu1 %238 }
 0x243   :  { %v244_v48 = vrot.slane %v239_v47, %v1226_v26  ;;  %v248_v49 = vrot.slane %v239_v47, %v1240_v46  ;;  %v327_v47 = vld [vmem:[#allocation8 + $0x50] sm:$0xff] }
 0x245   :  { %v251_v50 = vsub.f32 %v218_v38, %v244_v48  ;;  %v252_v51 = vsub.f32 %v220_v40, %v248_v49  ;;  %v335_v38 = vld [vmem:[#allocation8 + $0x90] sm:$0xff]  ;;  %v333_v40 = vld [vmem:[#allocation8 + $0x80] sm:$0xff]  ;;  %v326_v49 = vld [vmem:[#allocation8 + $0x48] sm:$0xff] }
 0x246   :  { %405 = vmatpush1.msra.mxu1 %v335_v38  ;;  %v331_v48 = vld [vmem:[#allocation8 + $0x70] sm:$0xff] }
 0x247   :  { %v253_v52 = vmul.f32 1.442695, %v251_v50  ;;  %v255_v53 = vmul.f32 1.442695, %v252_v51  ;;  %406 = vmatprep.subr.mxu1 %v333_v40  ;;  %911 = vmatpush3.msra.mxu0 %v331_v48  ;;  %v324_v50 = vld [vmem:[#allocation8 + $0x38] sm:$0xff]  ;;  %v565_v38 = vld [vmem:[#allocation10 + $0x130] sm:$0xff] }
 0x248   :  { %407 = vmatpush1.msra.mxu1 %v332_v42  ;;  %v328_v51 = vld [vmem:[#allocation8 + $0x58] sm:$0xff]  ;;  %912 = vmatprep.subr.mxu0 %v1130_v0  ;;  %v560_v40 = vld [vmem:[#allocation10 + $0x108] sm:$0xff] }
 0x249   :  { %975 = vpow2.f32 %v253_v52  ;;  %408 = vmatprep.subr.mxu1 %v330_v43  ;;  %v323_v52 = vld [vmem:[#allocation8 + $0x30] sm:$0xff]  ;;  %913 = vmatpush3.msra.mxu0 %v328_v51  ;;  %v558_v42 = vld [vmem:[#allocation10 + $0xf8] sm:$0xff]  ;;  %v551_v51 = vld [vmem:[#allocation10 + $0xc0] sm:$0xff] }
 0x24a   :  { %977 = vpow2.f32 %v255_v53  ;;  %409 = vmatpush1.msra.mxu1 %v329_v45  ;;  %v321_v53 = vld [vmem:[#allocation8 + $0x20] sm:$0xff]  ;;  %914 = vmatprep.subr.mxu0 %v1130_v0  ;;  %v562_v43 = vld [vmem:[#allocation10 + $0x118] sm:$0xff] }
 0x24b   :  { %410 = vmatprep.subr.mxu1 %v327_v47  ;;  %v555_v45 = vld [vmem:[#allocation10 + $0xe0] sm:$0xff]  ;;  %v554_v48 = vld [vmem:[#allocation10 + $0xd8] sm:$0xff] }
 0x24c   :  { %411 = vmatpush1.msra.mxu1 %v326_v49  ;;  %v559_v47 = vld [vmem:[#allocation10 + $0x100] sm:$0xff]  ;;  %v552_v49 = vld [vmem:[#allocation10 + $0xc8] sm:$0xff] }
 0x24d   :  { %412 = vmatprep.subr.mxu1 %v324_v50  ;;  %v556_v50 = vld [vmem:[#allocation10 + $0xe8] sm:$0xff] }
 0x24e   :  { %413 = vmatpush1.msra.mxu1 %v323_v52  ;;  %v549_v52 = vld [vmem:[#allocation10 + $0xb0] sm:$0xff] }
 0x24f   :  { %414 = vmatprep.subr.mxu1 %v321_v53  ;;  %v553_v53 = vld [vmem:[#allocation10 + $0xd0] sm:$0xff] }
 0x256   :  { %v1244_v54 = vpop.eup %975 }
 0x257   :  { %v1246_v55 = vpop.eup %977  ;;  %260 = vperm.xlu1 %973, %v1244_v54  }
 0x258   :  { %263 = vperm.xlu0 %974, %v1246_v55  }
 0x2d2   :  { %v261_v56 = vpop.permute.xlu1 %260 }
 0x2d3   :  { %v264_v57 = vpop.permute.xlu0 %263  ;;  %v268_v58 = vrot.slane %v261_v56, %v227_v39  ;;  %v318_v56 = vld [vmem:[#allocation8 + $0x8] sm:$0xff] }
 0x2d4   :  { %v272_v59 = vrot.slane %v264_v57, %v227_v39  ;;  %v322_v57 = vld [vmem:[#allocation8 + $0x28] sm:$0xff] }
 0x2d6   :  { %v273_v60 = vsel %vm233_vm1, %v272_v59, %v268_v58  ;;  %v317_v58 = vld [vmem:[#allocation8] sm:$0xff]  ;;  %v319_v59 = vld [vmem:[#allocation8 + $0x10] sm:$0xff] }
 0x2d7   :  { %v275_v61 = vsel %vm236_vm2, %v273_v60, 0.0  ;;  %v573_v60 = vld [vmem:[#allocation10 + $0x170] sm:$0xff] }
 0x2d8   :  { %276 = vadd.xlane.f32.xlu1 %v275_v61 }
 0x361   :  { %v277_v20 = vpop.xlane.xlu1 %276 }
 0x362   :  { %v282_v21 = vrot.slane %v277_v20, %v1226_v26  ;;  %v286_v23 = vrot.slane %v277_v20, %v1240_v46 }
 0x364   :  { %979 = vrcp.f32 %v282_v21  ;;  %v574_v21 = vld [vmem:[#allocation10 + $0x178] sm:$0xff] }
 0x365   :  { %981 = vrcp.f32 %v286_v23  ;;  %v569_v23 = vld [vmem:[#allocation10 + $0x150] sm:$0xff] }
 0x371   :  { %v980_v27 = vpop.eup %979 }
 0x372   :  { %v290_v29 = vmul.f32 %v980_v27, %v1244_v54  ;;  %v982_v33 = vpop.eup %981  ;;  %v325_v54 = vld [vmem:[#allocation8 + $0x40] sm:$0xff] }
 0x373   :  { %v292_v39 = vmul.f32 %v982_v33, %v1246_v55  ;;  %v320_v55 = vld [vmem:[#allocation8 + $0x18] sm:$0xff]  ;;  %915 = vmatpush3.msra.mxu0 %v325_v54  ;;  %v567_v27 = vld [vmem:[#allocation10 + $0x140] sm:$0xff]  ;;  %v548_v54 = vld [vmem:[#allocation10 + $0xa8] sm:$0xff] }
 0x374   :  { %295 = vperm.xlu0 %974, %v290_v29   ;;  %415 = vmatpush1.msra.mxu1 %v320_v55  ;;  %v566_v29 = vld [vmem:[#allocation10 + $0x138] sm:$0xff] }
 0x375   :  { %916 = vmatprep.subr.mxu0 %v1130_v0  ;;  %416 = vmatprep.subr.mxu1 %v318_v56  ;;  %v546_v55 = vld [vmem:[#allocation10 + $0x98] sm:$0xff] }
 0x376   :  { %917 = vmatpush3.msra.mxu0 %v322_v57  ;;  %417 = vmatpush1.msra.mxu1 %v317_v58  ;;  %v550_v56 = vld [vmem:[#allocation10 + $0xb8] sm:$0xff]  ;;  %v545_v57 = vld [vmem:[#allocation10 + $0x90] sm:$0xff]  ;;  %v543_v58 = vld [vmem:[#allocation10 + $0x80] sm:$0xff] }
 0x377   :  { %918 = vmatprep.subr.mxu0 %v1130_v0  ;;  %592 = vmatprep.subr.mxu1 %v573_v60  ;;  %v542_v60 = vld [vmem:[#allocation10 + $0x78] sm:$0xff] }
 0x378   :  { %300 = vperm.xlu0 %974, %v292_v39   ;;  %919 = vmatpush3.msra.mxu0 %v319_v59  ;;  %v547_v59 = vld [vmem:[#allocation10 + $0xa0] sm:$0xff] }
 0x379   :  { %923 = vmatprep.subr.mxu0 %v1130_v0 }
 0x3ef   :  { %v296_v61 = vpop.permute.xlu0 %295 }
 0x3f0   :  { %v303_v62 = vmul.f32 %v296_v61, %v1228_v30  ;;  %v760_v30 = vsub.s32 %v757_v13, %v1222_v22  ;;  %v540_v61 = vld [vmem:[#allocation10 + $0x68] sm:$0xff]  ;;  %v529_v13 = vld [vmem:[#allocation10 + $0x10] sm:$0xff] }
 0x3f2   :  { %v305_v63 = vrot.slane %v303_v62, 4 }
 0x3f3   :  { %v301_v1 = vpop.permute.xlu0 %300 }
 0x3f4   :  { %v306_v2 = vadd.f32 %v305_v63, %v303_v62  ;;  %v304_v3 = vmul.f32 %v301_v1, %v1233_v35  ;;  %v570_v35 = vld [vmem:[#allocation10 + $0x158] sm:$0xff]  ;;  %v544_v62 = vld [vmem:[#allocation10 + $0x88] sm:$0xff]  ;;  %v539_v63 = vld [vmem:[#allocation10 + $0x60] sm:$0xff] }
 0x3f5   :  { %v537_v1 = vld [vmem:[#allocation10 + $0x50] sm:$0xff] }
 0x3f6   :  { %v307_v4 = vrot.slane %v306_v2, 2  ;;  %v311_v5 = vrot.slane %v304_v3, 4 }
 0x3f8   :  { %v308_v6 = vadd.f32 %v307_v4, %v306_v2  ;;  %v312_v7 = vadd.f32 %v311_v5, %v304_v3  ;;  %v541_v2 = vld [vmem:[#allocation10 + $0x70] sm:$0xff]  ;;  %v536_v3 = vld [vmem:[#allocation10 + $0x48] sm:$0xff]  ;;  %v534_v4 = vld [vmem:[#allocation10 + $0x38] sm:$0xff] }
 0x3f9   :  { %v538_v5 = vld [vmem:[#allocation10 + $0x58] sm:$0xff] }
 0x3fa   :  { %v313_v10 = vrot.slane %v312_v7, 2  ;;  %v309_v11 = vrot.slane %v308_v6, 1 }
 0x3fc   :  { %v314_v12 = vadd.f32 %v313_v10, %v312_v7  ;;  %v310_v15 = vadd.f32 %v309_v11, %v308_v6  ;;  %v533_v6 = vld [vmem:[#allocation10 + $0x30] sm:$0xff]  ;;  %v531_v7 = vld [vmem:[#allocation10 + $0x20] sm:$0xff]  ;;  %v528_v10 = vld [vmem:[#allocation10 + $0x8] sm:$0xff] }
 0x3fd   :  { %v532_v11 = vld [vmem:[#allocation10 + $0x28] sm:$0xff] }
 0x3fe   :  { %v315_v14 = vrot.slane %v314_v12, 1  ;;  %v761_v24 = vrot.slane %v310_v15, %v760_v30 }
 0x400   :  { %v316_v16 = vadd.f32 %v315_v14, %v314_v12  ;;  %v527_v12 = vld [vmem:[#allocation10] sm:$0xff] }
 0x402   :  { %v384_v19 = vsel %vm233_vm1, %v316_v16, %v310_v15  ;;  %v768_v20 = vrot.slane %v316_v16, %v760_v30  ;;  %v365_v16 = vld [vmem:[%s1317_s5] sm:$0x7]  ;;  %s1135_s5 = smov [#allocation11]  }
 0x403   :  { %451 = vmatmul.mubr.f32.vlgmr.msra.gmra.mxu1 %v384_v19  ;;  %921 = vmatmul.mubr.f32.vlgmr.msra.gmra.mxu0 %v384_v19  ;;  %v370_v19 = vrot.slane %v365_v16, %v1226_v26 }
 0x404   :  { %v773_v25 = vrot.slane %v768_v20, 7  ;;  %593 = vmatpush1.msra.mxu1 %v572_v18  ;;  %656 = vmatprep.mubr.f32.mxu1 %v1130_v0  ;;  %v575_v18 = vld [vmem:[%s1318_s6] sm:$0x7]  ;;  %s789_s6 = sshll.u32 %s1135_s5, 4  ;;  %s790_s6 = int_to_ptr.vmem [resolvable:$true] %s789_s6 }
 0x405   :  { %594 = vmatprep.subr.mxu1 %v570_v35  ;;  %924 = vmatpush3.msra.mxu0 %v574_v21  ;;  %v580_v20 = vrot.slane %v575_v18, %v1226_v26  ;;  %s1093_s29 = scalar_lea.vmem %s790_s6, 64  ;;  %p1098_p12 = scmp.lt.s32.totalorder %s790_s6, %s790_s6 }
 0x406   :  { %595 = vmatpush1.msra.mxu1 %v569_v23  ;;  %925 = vmatprep.subr.mxu0 %v1130_v0  ;;  %v774_v33 = vsel %vm233_vm1, %v773_v25, %v761_v24  ;;  %v584_v24 = vrot.slane %v575_v18, %v1240_v46  ;;  %p1094_p11 = scmp.ne.s32.totalorder %s790_s6, %s1093_s29  ;;  %p1099_p13 = scmp.lt.s32.totalorder %s1093_s29, %s1093_s29 }
 0x407   :  { %596 = vmatprep.subr.mxu1 %v567_v27  ;;  %926 = vmatpush3.msra.mxu0 %v571_v28  ;;  %v776_v36 = vsel %vm775_vm3, %v773_v25, %v774_v33  ;;  %v374_v28 = vrot.slane %v365_v16, %v1240_v46 }
 0x408   :  { %597 = vmatpush1.msra.mxu1 %v566_v29  ;;  %927 = vmatprep.subr.mxu0 %v1130_v0  ;;  %v778_v39 = vsel %vm777_vm4, %v773_v25, %v776_v36  ;;  %p1100_p0 = por %p1099_p13, %p1098_p12 }
 0x409   :  { %598 = vmatprep.subr.mxu1 %v564_v31  ;;  %928 = vmatpush3.msra.mxu0 %v568_v32  ;;  %v780_v41 = vsel %vm779_vm5, %v773_v25, %v778_v39  ;;  %v377_v39 = vsub.s32 2, %v1222_v22 }
 0x40a   :  { %599 = vmatpush1.msra.mxu1 %v563_v34  ;;  %929 = vmatprep.subr.mxu0 %v1130_v0  ;;  %782 = vst [vmem:[#allocation11 + $0x2] sm:$0x3] %v780_v41  ;;  %p1101_p1 = pnand %p1100_p0, %p1094_p11 }
 0x40b   :  { %600 = vmatprep.subr.mxu1 %v561_v37  ;;  %930 = vmatpush3.msra.mxu0 %v565_v38 }
 0x40c   :  { %601 = vmatpush1.msra.mxu1 %v560_v40  ;;  %931 = vmatprep.subr.mxu0 %v1130_v0  ;;  %v588_v40 = vrot.slane %v575_v18, %v377_v39 }
 0x40d   :  { %602 = vmatprep.subr.mxu1 %v558_v42  ;;  %932 = vmatpush3.msra.mxu0 %v562_v43  ;;  %v378_v42 = vrot.slane %v365_v16, %v377_v39 }
 0x40e   :  { %603 = vmatpush1.msra.mxu1 %v557_v44  ;;  %933 = vmatprep.subr.mxu0 %v1130_v0 }
 0x40f   :  { %604 = vmatprep.subr.mxu1 %v555_v45  ;;  %934 = vmatpush3.msra.mxu0 %v559_v47 }
 0x410   :  { %605 = vmatpush1.msra.mxu1 %v554_v48  ;;  %935 = vmatprep.subr.mxu0 %v1130_v0 }
 0x411   :  { %606 = vmatprep.subr.mxu1 %v552_v49  ;;  %936 = vmatpush3.msra.mxu0 %v556_v50 }
 0x412   :  { %607 = vmatpush1.msra.mxu1 %v551_v51  ;;  %937 = vmatprep.subr.mxu0 %v1130_v0 }
 0x413   :  { %608 = vmatprep.subr.mxu1 %v549_v52  ;;  %938 = vmatpush3.msra.mxu0 %v553_v53 }
 0x414   :  { %609 = vmatpush1.msra.mxu1 %v548_v54  ;;  %939 = vmatprep.subr.mxu0 %v1130_v0 }
 0x415   :  { %610 = vmatprep.subr.mxu1 %v546_v55  ;;  %940 = vmatpush3.msra.mxu0 %v550_v56 }
 0x416   :  { %611 = vmatpush1.msra.mxu1 %v545_v57  ;;  %941 = vmatprep.subr.mxu0 %v1130_v0 }
 0x417   :  { %612 = vmatprep.subr.mxu1 %v543_v58  ;;  %942 = vmatpush3.msra.mxu0 %v547_v59 }
 0x418   :  { %613 = vmatpush1.msra.mxu1 %v542_v60  ;;  %943 = vmatprep.subr.mxu0 %v1130_v0 }
 0x419   :  { %614 = vmatprep.subr.mxu1 %v540_v61  ;;  %944 = vmatpush3.msra.mxu0 %v544_v62 }
 0x41a   :  { %615 = vmatpush1.msra.mxu1 %v539_v63  ;;  %945 = vmatprep.subr.mxu0 %v1130_v0 }
 0x41b   :  { %616 = vmatprep.subr.mxu1 %v537_v1  ;;  %946 = vmatpush3.msra.mxu0 %v541_v2 }
 0x41c   :  { %617 = vmatpush1.msra.mxu1 %v536_v3  ;;  %947 = vmatprep.subr.mxu0 %v1130_v0 }
 0x41d   :  { %618 = vmatprep.subr.mxu1 %v534_v4  ;;  %948 = vmatpush3.msra.mxu0 %v538_v5 }
 0x41e   :  { %619 = vmatpush1.msra.mxu1 %v533_v6  ;;  %949 = vmatprep.subr.mxu0 %v1130_v0 }
 0x41f   :  { %620 = vmatprep.subr.mxu1 %v531_v7  ;;  %950 = vmatpush3.msra.mxu0 %v535_v8 }
 0x420   :  { %621 = vmatpush1.msra.mxu1 %v530_v9  ;;  %951 = vmatprep.subr.mxu0 %v1130_v0 }
 0x421   :  { %622 = vmatprep.subr.mxu1 %v528_v10  ;;  %952 = vmatpush3.msra.mxu0 %v532_v11 }
 0x422   :  { %623 = vmatpush1.msra.mxu1 %v527_v12  ;;  %953 = vmatprep.subr.mxu0 %v1130_v0 }
 0x423   :  { %657 = vmatmul.mubr.f32.vlgmr.msra.gmra.mxu1 %v1215_v17  ;;  %954 = vmatpush3.msra.mxu0 %v529_v13 }
 0x424   :  { %955 = vmatprep.mubr.msk.f32.mxu0 %vm1131_vm0, %v1130_v0 }
 0x425   :  { %956 = vmatmul.mubr.f32.vlgmr.msra.gmra.mxu0 %v1215_v17 }
 0x4c3   :  { %v523_v14 = vpop.f32.mrf.mxu0  ;;  %v452_v30 = vpop.f32.mrf.mxu1 }
 0x4c4   :  { %v453_v0 = vadd.f32 %v452_v30, %v370_v19  ;;  %v524_v45 = vadd.f32 %v523_v14, %v378_v42 }
 0x4c5   :  { %v922_v15 = vpop.f32.mrf.mxu0  ;;  %v454_v35 = vpop.f32.mrf.mxu1 }
 0x4c6   :  { %v455_v34 = vadd.f32 %v454_v35, %v374_v28 }
 0x4e3   :  { %v658_v21 = vpop.f32.mrf.mxu1 }
 0x4e4   :  { %v659_v23 = vadd.f32 %v658_v21, %v580_v20 }
 0x4e5   :  { %v660_v25 = vpop.f32.mrf.mxu1  ;;  %v729_v27 = vpop.f32.mrf.mxu0 }
 0x4e6   :  { %v733_v29 = vadd.f32 %v659_v23, %v453_v0  ;;  %v661_v33 = vadd.f32 %v660_v25, %v584_v24  ;;  %v730_v44 = vadd.f32 %v729_v27, %v588_v40 }
 0x4e7   :  { %v957_v31 = vpop.f32.mrf.mxu0 }
 0x4e8   :  { %v800_v32 = vmul.f32 -1.442695, %v733_v29  ;;  %v740_v36 = vadd.f32 %v661_v33, %v455_v34 }
 0x4ea   :  { %983 = vpow2.f32 %v800_v32  ;;  %v801_v37 = vmul.f32 -1.442695, %v740_v36 }
 0x4ec   :  { %985 = vpow2.f32 %v801_v37 }
 0x4f7   :  { %v984_v26 = vpop.eup %983 }
 0x4f8   :  { %v737_v38 = vadd.f32 1.0, %v984_v26 }
 0x4f9   :  { %v986_v41 = vpop.eup %985 }
 0x4fa   :  { %987 = vrcp.f32 %v737_v38  ;;  %v744_v43 = vadd.f32 1.0, %v986_v41 }
 0x4fc   :  { %989 = vrcp.f32 %v744_v43 }
 0x507   :  { %v988_v46 = vpop.eup %987 }
 0x508   :  { %v747_v47 = vmul.f32 %v988_v46, %v730_v44 }
 0x509   :  { %v990_v49 = vpop.eup %989 }
 0x50a   :  { %v748_v48 = vadd.f32 %v747_v47, %v524_v45  ;;  %v750_v50 = vsub.f32 1.0, %v990_v49  ;;  %v752_v53 = vmul.f32 %v990_v49, %v1215_v17 }
 0x50c   :  { %991 = vtanh.f32 %v748_v48 }
 0x519   :  { %v992_v51 = vpop.eup %991 }
 0x51a   :  { %v751_v52 = vmul.f32 %v992_v51, %v750_v50 }
 0x51c   :  { %v753_v22 = vadd.f32 %v752_v53, %v751_v52 }
 0x51e   :  { %754 = vst [vmem:[#allocation11] sm:$0x3] %v753_v22 }
 0x51f   :  { %1104 = shalt.err (!%p1101_p1)
}
 0x520   :  { %792 = dma.vmem_to_hbm [thread:$0]  %s790_s6, 64, %s1319_s7, [#allocation4]  }
 0x521   :  { %1119 = dma.done.wait [#allocation4], 64  }
 0x522   :  { %1120 = vsyncadd [#allocation4], 4294967232 }
 0x523   :  { %796 = vsyncpa [#allocation3], 1 }
 0x524   :  { %797 = vsyncpa [#allocation6], 1 }
 0x525   :  { %798 = vsyncpa [#allocation9], 1 }
 0x526   :  { %799 = vsyncpa [#allocation4], 1 }

</bundles_post_ra>
